<compile_context>
chip_gen: v7x
topology: tpu7x:2x2x1
jax: 0.10.0
libtpu: 0.0.40
codegen_flags: <defaults>
</compile_context>

<pallas_src>
import functools

import numpy as np
import jax
import jax.numpy as jnp
from jax.experimental import pallas as pl
from jax.experimental.pallas import tpu as pltpu


# ----------------------------------------------------------------------------
# Glue: exact entmax15 (sort-based, matches the `entmax` package)
# ----------------------------------------------------------------------------
def entmax15(x, axis=0):
    x = x - jnp.max(x, axis=axis, keepdims=True)
    x = x / 2.0
    xsrt = -jnp.sort(-x, axis=axis)  # descending sort
    d = x.shape[axis]
    shape = [1] * x.ndim
    shape[axis] = d
    rho = jnp.arange(1, d + 1, dtype=x.dtype).reshape(shape)
    mean = jnp.cumsum(xsrt, axis=axis) / rho
    mean_sq = jnp.cumsum(xsrt * xsrt, axis=axis) / rho
    ss = rho * (mean_sq - mean * mean)
    delta = (1.0 - ss) / rho
    delta_nz = jnp.clip(delta, 0.0, None)
    tau = mean - jnp.sqrt(delta_nz)
    support = jnp.sum((tau <= xsrt).astype(jnp.int32), axis=axis, keepdims=True)
    tau_star = jnp.take_along_axis(tau, support - 1, axis=axis)
    return jnp.clip(x - tau_star, 0.0, None) ** 2


# ----------------------------------------------------------------------------
# Pallas kernel: the DeTree forward hot path (lane-dense, batch-tiled)
# ----------------------------------------------------------------------------
def _detree_kernel(x_ref, w_ref, bias_ref, selS_ref, selB_ref, respbd_ref,
                   out_ref, *, D, TL):
    # gate_pos for ALL trees/depths at once:
    #   gp = clip(0.5*(fv - thr)*exp(-log_temp) + 0.5, -0.5, 1.5)
    # with the scale/shift folded into w_eff / bias in glue.
    gp = jnp.clip(
        jnp.dot(x_ref[...], w_ref[...], preferred_element_type=jnp.float32)
        + bias_ref[...],
        -0.5, 1.5)                                            # [TB, T*D]

    # One fused selector matmul produces every depth's per-leaf term,
    # lane-dense: big[:, d*TL:(d+1)*TL] = bin[d] + gp_d * (1 - 2*bin[d]).
    big = selB_ref[...] + jnp.dot(gp, selS_ref[...],
                                  preferred_element_type=jnp.float32)  # [TB, D*T*L]

    # Path product over depth (lane-aligned 128-wide static slices).
    rw = big[:, 0:TL]
    for d in range(1, D):
        rw = rw * big[:, d * TL:(d + 1) * TL]                 # [TB, T*L]

    # leaf_distri: one block-diagonal matmul [TB, T*L] @ [T*L, T*C] + one store.
    out_ref[...] = jnp.dot(rw, respbd_ref[...],
                           preferred_element_type=jnp.float32)


def detree_forward(x, w_eff, bias, selS_cat, selB_cat, respbd,
                   *, num_trees, depth, response_dim, block_b=512):
    B, F = x.shape
    T, D, C = num_trees, depth, response_dim
    L = 2 ** D
    TL = T * L

    TB = min(block_b, B)
    assert B % TB == 0, "batch must be divisible by the batch tile"
    grid = (B // TB,)

    def resident(shape):
        # parameters: same block every step -> fetched once, stay VMEM-resident
        nd = len(shape)
        return pl.BlockSpec(shape, lambda i, nd=nd: (0,) * nd)

    kernel = functools.partial(_detree_kernel, D=D, TL=TL)

    return pl.pallas_call(
        kernel,
        out_shape=jax.ShapeDtypeStruct((B, T * C), jnp.float32),
        grid=grid,
        in_specs=[
            pl.BlockSpec((TB, F), lambda i: (i, 0)),   # x: batch-tiled, pipelined
            resident(w_eff.shape),                     # [F, T*D]
            resident(bias.shape),                      # [1, T*D]
            resident(selS_cat.shape),                  # [T*D, D*T*L]
            resident(selB_cat.shape),                  # [1, D*T*L]
            resident(respbd.shape),                    # [T*L, T*C]
        ],
        out_specs=pl.BlockSpec((TB, T * C), lambda i: (i, 0)),
        compiler_params=pltpu.CompilerParams(
            dimension_semantics=("parallel",)),        # megacore on v7x
    )(x, w_eff, bias, selS_cat, selB_cat, respbd)


# ----------------------------------------------------------------------------
# Glue: precompute selector matrices and block-diagonal response (once)
# ----------------------------------------------------------------------------
def build_detree_constants(bin_codes, response, num_trees, depth, response_dim):
    T, D, C = num_trees, depth, response_dim
    L = 2 ** D
    b = np.asarray(bin_codes, dtype=np.float32)          # [D, L]
    resp = np.asarray(response, dtype=np.float32)        # [T, C, L]

    # selS_cat[t*D+d, d*T*L + t*L + l] = 1 - 2*bin[d,l]
    # selB_cat[0,     d*T*L + t*L + l] = bin[d,l]
    selS_cat = np.zeros((T * D, D * T * L), dtype=np.float32)
    selB_cat = np.zeros((1, D * T * L), dtype=np.float32)
    for d in range(D):
        selB_cat[0, d * T * L:(d + 1) * T * L] = np.tile(b[d], T)
        for t in range(T):
            selS_cat[t * D + d,
                     d * T * L + t * L: d * T * L + (t + 1) * L] = 1.0 - 2.0 * b[d]

    # block-diagonal response^T: respbd[t*L+l, t*C+c] = response[t, c, l]
    respbd = np.zeros((T * L, T * C), dtype=np.float32)
    for t in range(T):
        respbd[t * L:(t + 1) * L, t * C:(t + 1) * C] = resp[t].T

    return jnp.asarray(selS_cat), jnp.asarray(selB_cat), jnp.asarray(respbd)


# ----------------------------------------------------------------------------
# Pure-JAX reference (mirrors the PyTorch einsums exactly) for validation
# ----------------------------------------------------------------------------
def detree_reference(x, choice_weight, thresholds, log_temps, bin_codes, resp,
                     num_trees, depth, response_dim):
    B = x.shape[0]
    T, D, C = num_trees, depth, response_dim
    fv = jnp.einsum('bf,fnd->bnd', x, choice_weight.reshape(x.shape[1], T, D))
    tl = (fv - thresholds.reshape(T, D)) * jnp.exp(-log_temps.reshape(T, D))
    gates = jnp.stack([-tl, tl], axis=-1)
    gates = jnp.clip(0.5 * gates + 0.5, -0.5, 1.5)
    bin1hot = jnp.stack([bin_codes, 1.0 - bin_codes], axis=-1)      # [D, L, 2]
    path = jnp.einsum('btds,dcs->btdc', gates, bin1hot)
    rw = jnp.prod(path, axis=-2)                                    # [B, T, L]
    out = jnp.einsum('btl,tcl->btc', rw, resp)                      # [B, T, C]
    return out.reshape(B, T * C)


# ----------------------------------------------------------------------------
# Main: deterministic parameter setup + data-aware init (as in DeTree.initialize)
# ----------------------------------------------------------------------------
if __name__ == "__main__":
    B, F = 128, 16          # batch, in_features
    T, D, C = 8, 4, 4       # num_trees, depth (= nFeature), response_dim
    L = 2 ** D              # leaves (T*L = 128 = one full lane width)

    key = jax.random.PRNGKey(0)
    k_x, k_att, k_resp, k_beta = jax.random.split(key, 4)

    x = jax.random.normal(k_x, (B, F), dtype=jnp.float32)

    # feat_attention ~ U[0,1)  (nn.init.uniform_), shape [F, T*D]
    feat_attention = jax.random.uniform(k_att, (F, T * D), dtype=jnp.float32)
    # response ~ N(0,1) (nn.init.normal_), shape [T, C, L]
    response = jax.random.normal(k_resp, (T, C, L), dtype=jnp.float32)

    # choice_weight = entmax15(feat_attention, dim=0)
    choice_weight = entmax15(feat_attention, axis=0)                # [F, T*D]

    # bin_codes[d, l] = (l // 2**d) % 2  (float)
    idx = jnp.arange(L)[None, :]
    off = (2 ** jnp.arange(D))[:, None]
    bin_codes = ((idx // off) % 2).astype(jnp.float32)              # [D, L]

    # ---- data-aware initialize() (one-time, in glue) -----------------------
    fv_init = x @ choice_weight                                     # [B, T*D]
    q = 100.0 * jax.random.beta(k_beta, 1.0, 1.0, (T * D,))         # Beta(1,1)
    thresholds = jax.vmap(jnp.percentile)(fv_init.T, q)             # [T*D]
    temps = jnp.max(jnp.abs(fv_init - thresholds[None, :]), axis=0) # q=100 pct
    log_temps = jnp.log(temps + 1e-6)                               # [T*D]

    # hoisted parameter-only transforms (no exp / extra elementwise in kernel)
    inv_temp = jnp.exp(-log_temps)
    w_eff = (0.5 * choice_weight * inv_temp[None, :]).astype(jnp.float32)  # [F, T*D]
    bias = (0.5 - 0.5 * thresholds * inv_temp)[None, :].astype(jnp.float32)  # [1, T*D]

    selS_cat, selB_cat, respbd = build_detree_constants(bin_codes, response,
                                                        T, D, C)

    # ---- run the Pallas kernel (TB=min(512,B)=128 -> grid=(1,)) -------------
    out = detree_forward(x, w_eff, bias, selS_cat, selB_cat, respbd,
                         num_trees=T, depth=D, response_dim=C, block_b=512)
    out = jax.block_until_ready(out)

    ref = detree_reference(x, choice_weight, thresholds, log_temps, bin_codes,
                           response, num_trees=T, depth=D, response_dim=C)
    assert out.shape == (B, T * C)
    assert jnp.allclose(out, ref, atol=5e-4, rtol=5e-4)

    print("KERNEL_OK")
</pallas_src>

<mosaic_0001>
module attributes {stable_mosaic.version = 11 : i64} {
  func.func @_detree_kernel(%arg0: i32, %arg1: memref<128x16xf32, #tpu.memory_space<vmem>>, %arg2: memref<16x32xf32, #tpu.memory_space<vmem>>, %arg3: memref<1x32xf32, #tpu.memory_space<vmem>>, %arg4: memref<32x512xf32, #tpu.memory_space<vmem>>, %arg5: memref<1x512xf32, #tpu.memory_space<vmem>>, %arg6: memref<128x32xf32, #tpu.memory_space<vmem>>, %arg7: memref<128x32xf32, #tpu.memory_space<vmem>>) attributes {dimension_semantics = [#tpu.dimension_semantics<parallel>], iteration_bounds = array<i64: 1>, scalar_prefetch = 0 : i64, scratch_operands = 0 : i64, tpu.core_type = #tpu.core_type<tc>, window_params = [{transform_indices = @transform_0, window_bounds = array<i64: 128, 16>}, {pipeline_mode = #tpu.pipeline_mode<synchronous>, transform_indices = @transform_1, window_bounds = array<i64: 16, 32>}, {pipeline_mode = #tpu.pipeline_mode<synchronous>, transform_indices = @transform_2, window_bounds = array<i64: 1, 32>}, {pipeline_mode = #tpu.pipeline_mode<synchronous>, transform_indices = @transform_3, window_bounds = array<i64: 32, 512>}, {pipeline_mode = #tpu.pipeline_mode<synchronous>, transform_indices = @transform_4, window_bounds = array<i64: 1, 512>}, {pipeline_mode = #tpu.pipeline_mode<synchronous>, transform_indices = @transform_5, window_bounds = array<i64: 128, 32>}, {transform_indices = @transform_6, window_bounds = array<i64: 128, 32>}]} {
    %c0 = arith.constant 0 : index
    %c0_0 = arith.constant 0 : index
    %0 = vector.load %arg1[%c0, %c0_0] : memref<128x16xf32, #tpu.memory_space<vmem>>, vector<128x16xf32>
    %c0_1 = arith.constant 0 : index
    %c0_2 = arith.constant 0 : index
    %1 = vector.load %arg2[%c0_1, %c0_2] : memref<16x32xf32, #tpu.memory_space<vmem>>, vector<16x32xf32>
    %cst = arith.constant dense<0.000000e+00> : vector<128x32xf32>
    %2 = tpu.matmul %0, %1, %cst {dimension_numbers = #tpu.dot_dimension_numbers<[1], [0], [0], [1], [0, 0, 1, 1], [], []>} : vector<128x16xf32>, vector<16x32xf32>, vector<128x32xf32> -> vector<128x32xf32>
    %c0_3 = arith.constant 0 : index
    %c0_4 = arith.constant 0 : index
    %3 = vector.load %arg3[%c0_3, %c0_4] : memref<1x32xf32, #tpu.memory_space<vmem>>, vector<1x32xf32>
    %4 = vector.broadcast %3 : vector<1x32xf32> to vector<128x32xf32>
    %5 = arith.addf %2, %4 : vector<128x32xf32>
    %cst_5 = arith.constant -5.000000e-01 : f32
    %cst_6 = arith.constant 1.500000e+00 : f32
    %6 = vector.broadcast %cst_5 : f32 to vector<128x32xf32>
    %7 = arith.maximumf %6, %5 : vector<128x32xf32>
    %8 = vector.broadcast %cst_6 : f32 to vector<128x32xf32>
    %9 = arith.minimumf %8, %7 : vector<128x32xf32>
    %c0_7 = arith.constant 0 : index
    %c0_8 = arith.constant 0 : index
    %10 = vector.load %arg5[%c0_7, %c0_8] : memref<1x512xf32, #tpu.memory_space<vmem>>, vector<1x512xf32>
    %c0_9 = arith.constant 0 : index
    %c0_10 = arith.constant 0 : index
    %11 = vector.load %arg4[%c0_9, %c0_10] : memref<32x512xf32, #tpu.memory_space<vmem>>, vector<32x512xf32>
    %cst_11 = arith.constant dense<0.000000e+00> : vector<128x512xf32>
    %12 = tpu.matmul %9, %11, %cst_11 {dimension_numbers = #tpu.dot_dimension_numbers<[1], [0], [0], [1], [0, 0, 1, 1], [], []>} : vector<128x32xf32>, vector<32x512xf32>, vector<128x512xf32> -> vector<128x512xf32>
    %13 = vector.broadcast %10 : vector<1x512xf32> to vector<128x512xf32>
    %14 = arith.addf %13, %12 : vector<128x512xf32>
    %15 = vector.extract_strided_slice %14 {offsets = [0, 0], sizes = [128, 128], strides = [1, 1]} : vector<128x512xf32> to vector<128x128xf32>
    %16 = vector.extract_strided_slice %14 {offsets = [0, 128], sizes = [128, 128], strides = [1, 1]} : vector<128x512xf32> to vector<128x128xf32>
    %17 = arith.mulf %15, %16 : vector<128x128xf32>
    %18 = vector.extract_strided_slice %14 {offsets = [0, 256], sizes = [128, 128], strides = [1, 1]} : vector<128x512xf32> to vector<128x128xf32>
    %19 = arith.mulf %17, %18 : vector<128x128xf32>
    %20 = vector.extract_strided_slice %14 {offsets = [0, 384], sizes = [128, 128], strides = [1, 1]} : vector<128x512xf32> to vector<128x128xf32>
    %21 = arith.mulf %19, %20 : vector<128x128xf32>
    %c0_12 = arith.constant 0 : index
    %c0_13 = arith.constant 0 : index
    %22 = vector.load %arg6[%c0_12, %c0_13] : memref<128x32xf32, #tpu.memory_space<vmem>>, vector<128x32xf32>
    %cst_14 = arith.constant dense<0.000000e+00> : vector<128x32xf32>
    %23 = tpu.matmul %21, %22, %cst_14 {dimension_numbers = #tpu.dot_dimension_numbers<[1], [0], [0], [1], [0, 0, 1, 1], [], []>} : vector<128x128xf32>, vector<128x32xf32>, vector<128x32xf32> -> vector<128x32xf32>
    %c0_15 = arith.constant 0 : index
    %c0_16 = arith.constant 0 : index
    %24 = vector.load %arg7[%c0_15, %c0_16] : memref<128x32xf32, #tpu.memory_space<vmem>>, vector<128x32xf32>
    tpu.vector_store %arg7[%c0_15, %c0_16], %23 {strides = array<i32>} : memref<128x32xf32, #tpu.memory_space<vmem>>, vector<128x32xf32>,
    return
  }
  func.func @transform_0(%arg0: i32) -> (i32, i32) {
    %c0_i32 = arith.constant 0 : i32
    %c0_i32_0 = arith.constant 0 : i32
    return %arg0, %c0_i32 : i32, i32
  }
  func.func @transform_1(%arg0: i32) -> (i32, i32) {
    %c0_i32 = arith.constant 0 : i32
    %c0_i32_0 = arith.constant 0 : i32
    %c0_i32_1 = arith.constant 0 : i32
    return %c0_i32, %c0_i32_0 : i32, i32
  }
  func.func @transform_2(%arg0: i32) -> (i32, i32) {
    %c0_i32 = arith.constant 0 : i32
    %c0_i32_0 = arith.constant 0 : i32
    %c0_i32_1 = arith.constant 0 : i32
    return %c0_i32, %c0_i32_0 : i32, i32
  }
  func.func @transform_3(%arg0: i32) -> (i32, i32) {
    %c0_i32 = arith.constant 0 : i32
    %c0_i32_0 = arith.constant 0 : i32
    %c0_i32_1 = arith.constant 0 : i32
    return %c0_i32, %c0_i32_0 : i32, i32
  }
  func.func @transform_4(%arg0: i32) -> (i32, i32) {
    %c0_i32 = arith.constant 0 : i32
    %c0_i32_0 = arith.constant 0 : i32
    %c0_i32_1 = arith.constant 0 : i32
    return %c0_i32, %c0_i32_0 : i32, i32
  }
  func.func @transform_5(%arg0: i32) -> (i32, i32) {
    %c0_i32 = arith.constant 0 : i32
    %c0_i32_0 = arith.constant 0 : i32
    %c0_i32_1 = arith.constant 0 : i32
    return %c0_i32, %c0_i32_0 : i32, i32
  }
  func.func @transform_6(%arg0: i32) -> (i32, i32) {
    %c0_i32 = arith.constant 0 : i32
    %c0_i32_0 = arith.constant 0 : i32
    return %arg0, %c0_i32 : i32, i32
  }
}

</mosaic_0001>

<bundles_post_ra>
// kernel: tpu_custom_call.1
= control target key start
LH: loop header
LB: loop body
LE: loop exit
PB: predicated region body
PF: predicated region fallthrough
CT: control target
= control target key end

     0   :  { %vm48_vm0 = vcmask 130048   ;;  %v1212_v43 = vmov 0.0   ;;  %vm291_vm1 = vcmask 261120   ;;  %s1638_s1 = inlined_call_operand.vmem [shape: f32[16,32], index: 1, kind: input, shape index: {}]   ;;  %s1639_s0 = inlined_call_operand.vmem [shape: f32[128,16], index: 0, kind: input, shape index: {}]   ;;  %s1640_s3 = inlined_call_operand.vmem [shape: f32[32,512], index: 3, kind: input, shape index: {}]   ;;  %s1641_s5 = inlined_call_operand.vmem [shape: f32[128,32], index: 5, kind: input, shape index: {}]   ;;  %s1642_s2 = inlined_call_operand.vmem [shape: f32[1,32], index: 2, kind: input, shape index: {}]   ;;  %s1643_s4 = inlined_call_operand.vmem [shape: f32[1,512], index: 4, kind: input, shape index: {}]   ;;  %s1644_s6 = inlined_call_operand.vmem [shape: f32[128,32], index: 6, kind: output, shape index: {}]  }
   0x1   :  { %v39_v0 = vld [vmem:[%s1638_s1] sm:$0xff]  ;;  %v40_v1 = vld [vmem:[%s1638_s1 + $0x8] sm:$0xff]  ;;  %v25_v5 = vld [vmem:[%s1639_s0 + $0x10] sm:$0xff]  ;;  %404 = vmatprep.mubr.f32.mxu1 %v1212_v43 }
   0x2   :  { %v23_v2 = vld [vmem:[%s1639_s0] sm:$0xff]  ;;  %v1159_v3 = vpack.c.bf16 %v40_v1, %v39_v0  ;;  %v24_v4 = vld [vmem:[%s1639_s0 + $0x8] sm:$0xff]  ;;  %v278_v6 = vld [vmem:[%s1640_s3 + $0x18] sm:$0xff] }
   0x3   :  { %1079 = vmatprep.mubr.msk.f32.mxu0 %vm48_vm0, %v23_v2  ;;  %v282_v7 = vld [vmem:[%s1640_s3 + $0x38] sm:$0xff]  ;;  %v277_v8 = vld [vmem:[%s1640_s3 + $0x10] sm:$0xff]  ;;  %v27_v18 = vld [vmem:[%s1639_s0 + $0x20] sm:$0xff] }
   0x4   :  { %1160 = vmatprep.subr.bf16.mxu0 %v1159_v3  ;;  %v1171_v9 = vpack.c.bf16 %v282_v7, %v278_v6  ;;  %v281_v10 = vld [vmem:[%s1640_s3 + $0x30] sm:$0xff]  ;;  %v286_v11 = vld [vmem:[%s1640_s3 + $0x58] sm:$0xff]  ;;  %v28_v20 = vld [vmem:[%s1639_s0 + $0x28] sm:$0xff] }
   0x5   :  { %1162 = vmatpush3.bf16.msra.mxu0 %v1159_v3  ;;  %v290_v12 = vld [vmem:[%s1640_s3 + $0x78] sm:$0xff]  ;;  %v1173_v14 = vpack.c.bf16 %v281_v10, %v277_v8  ;;  %v285_v16 = vld [vmem:[%s1640_s3 + $0x50] sm:$0xff]  ;;  %v31_v23 = vld [vmem:[%s1639_s0 + $0x40] sm:$0xff] }
   0x6   :  { %v26_v13 = vld [vmem:[%s1639_s0 + $0x18] sm:$0xff]  ;;  %v1175_v15 = vpack.c.bf16 %v290_v12, %v286_v11  ;;  %v289_v17 = vld [vmem:[%s1640_s3 + $0x70] sm:$0xff]  ;;  %1172 = vmatprep.subr.bf16.mxu0 %v1171_v9  ;;  %v32_v24 = vld [vmem:[%s1639_s0 + $0x48] sm:$0xff] }
   0x7   :  { %v1177_v19 = vpack.c.bf16 %v289_v17, %v285_v16  ;;  %v29_v21 = vld [vmem:[%s1639_s0 + $0x30] sm:$0xff]  ;;  %v30_v22 = vld [vmem:[%s1639_s0 + $0x38] sm:$0xff]  ;;  %v35_v27 = vld [vmem:[%s1639_s0 + $0x60] sm:$0xff] }
   0x8   :  { %1080 = vmatmul.mubr.msk.f32.vlgmr.msra.gmra.mrb[0].mxu0 %vm48_vm0, %v24_v4  ;;  %v33_v25 = vld [vmem:[%s1639_s0 + $0x50] sm:$0xff]  ;;  %v34_v26 = vld [vmem:[%s1639_s0 + $0x58] sm:$0xff]  ;;  %v36_v28 = vld [vmem:[%s1639_s0 + $0x68] sm:$0xff] }
   0x9   :  { %1082 = vmatprep.mubr.msk.f32.mxu0 %vm48_vm0, %v25_v5  ;;  %1174 = vmatpush1.bf16.msra.mxu0 %v1173_v14  ;;  %v37_v29 = vld [vmem:[%s1639_s0 + $0x70] sm:$0xff]  ;;  %v38_v30 = vld [vmem:[%s1639_s0 + $0x78] sm:$0xff]  ;;  %v276_v31 = vld [vmem:[%s1640_s3 + $0x8] sm:$0xff] }
   0xa   :  { %1176 = vmatprep.subr.bf16.mxu0 %v1175_v15  ;;  %v280_v32 = vld [vmem:[%s1640_s3 + $0x28] sm:$0xff]  ;;  %v275_v34 = vld [vmem:[%s1640_s3] sm:$0xff]  ;;  %v797_v54 = vld [vmem:[%s1641_s5 + $0x10] sm:$0xff] }
   0xb   :  { %v1163_v33 = vpack.c.bf16 %v280_v32, %v276_v31  ;;  %v279_v35 = vld [vmem:[%s1640_s3 + $0x20] sm:$0xff]  ;;  %v284_v37 = vld [vmem:[%s1640_s3 + $0x48] sm:$0xff]  ;;  %v798_v55 = vld [vmem:[%s1641_s5 + $0x18] sm:$0xff] }
   0xc   :  { %1083 = vmatmul.mubr.msk.f32.gmra.mrb[2].mxu0 %vm48_vm0, %v26_v13  ;;  %v1165_v36 = vpack.c.bf16 %v279_v35, %v275_v34  ;;  %v288_v38 = vld [vmem:[%s1640_s3 + $0x68] sm:$0xff]  ;;  %v283_v40 = vld [vmem:[%s1640_s3 + $0x40] sm:$0xff]  ;;  %v1183_v60 = vpack.c.bf16 %v798_v55, %v797_v54  ;;  %v801_v8 = vld [vmem:[%s1641_s5 + $0x30] sm:$0xff] }
   0xd   :  { %1085 = vmatprep.mubr.msk.f32.mxu0 %vm48_vm0, %v27_v18  ;;  %1178 = vmatpush1.bf16.msra.mxu0 %v1177_v19  ;;  %v1167_v39 = vpack.c.bf16 %v288_v38, %v284_v37  ;;  %v287_v41 = vld [vmem:[%s1640_s3 + $0x60] sm:$0xff]  ;;  %v796_v45 = vld [vmem:[%s1641_s5 + $0x8] sm:$0xff]  ;;  %v802_v9 = vld [vmem:[%s1641_s5 + $0x38] sm:$0xff] }
   0xe   :  { %1164 = vmatprep.subr.bf16.mxu1 %v1163_v33  ;;  %v1169_v42 = vpack.c.bf16 %v287_v41, %v283_v40  ;;  %v795_v44 = vld [vmem:[%s1641_s5] sm:$0xff]  ;;  %v800_v0 = vld [vmem:[%s1641_s5 + $0x28] sm:$0xff]  ;;  %v1191_v12 = vpack.c.bf16 %v802_v9, %v801_v8 }
   0xf   :  { %1166 = vmatpush1.bf16.msra.mxu1 %v1165_v36  ;;  %v1179_v46 = vpack.c.bf16 %v796_v45, %v795_v44  ;;  %v1377_v47 = vld [vmem:[%s1642_s2] ss:$0 sm:$0xff]  ;;  %v804_v16 = vld [vmem:[%s1641_s5 + $0x48] sm:$0xff] }
  0x10   :  { %1086 = vmatmul.mubr.msk.f32.gmra.mrb[4].mxu0 %vm48_vm0, %v28_v20  ;;  %1168 = vmatprep.subr.bf16.mxu1 %v1167_v39  ;;  %v799_v63 = vld [vmem:[%s1641_s5 + $0x20] sm:$0xff] }
  0x11   :  { %1088 = vmatprep.mubr.msk.f32.mxu0 %vm48_vm0, %v29_v21  ;;  %v1187_v4 = vpack.c.bf16 %v800_v0, %v799_v63  ;;  %v803_v15 = vld [vmem:[%s1641_s5 + $0x40] sm:$0xff]  ;;  %v808_v0 = vld [vmem:[%s1641_s5 + $0x68] sm:$0xff] }
  0x12   :  { %v1195_v20 = vpack.c.bf16 %v804_v16, %v803_v15  ;;  %v274_v8 = vld [vmem:[%s1643_s4] sm:$0xf] }
  0x13   :  { %1170 = vmatpush1.bf16.msra.mxu1 %v1169_v42 }
  0x14   :  { %1089 = vmatmul.mubr.msk.f32.gmra.mrb[6].mxu0 %vm48_vm0, %v30_v22  ;;  %1180 = vmatprep.subr.bf16.mxu1 %v1179_v46 }
  0x15   :  { %1091 = vmatprep.mubr.msk.f32.mxu0 %vm48_vm0, %v31_v23 }
  0x18   :  { %1092 = vmatmul.mubr.msk.f32.gmra.mrb[8].mxu0 %vm48_vm0, %v32_v24 }
  0x19   :  { %1094 = vmatprep.mubr.msk.f32.mxu0 %vm48_vm0, %v33_v25 }
  0x1c   :  { %1095 = vmatmul.mubr.msk.f32.gmra.mrb[10].mxu0 %vm48_vm0, %v34_v26 }
  0x1d   :  { %1097 = vmatprep.mubr.msk.f32.mxu0 %vm48_vm0, %v35_v27 }
  0x20   :  { %1098 = vmatmul.mubr.msk.f32.gmra.mrb[12].mxu0 %vm48_vm0, %v36_v28 }
  0x21   :  { %1100 = vmatprep.mubr.msk.f32.mxu0 %vm48_vm0, %v37_v29 }
  0x24   :  { %1101 = vmatmul.mubr.msk.f32.gmra.mrb[14].mxu0 %vm48_vm0, %v38_v30 }
  0x25   :  { %565 = vmatprep.mubr.f32.mxu0 %v1212_v43 }
  0xdb   :  { %v1081_v48 = vpop.f32.mrb[0].mxu0 }
  0xdc   :  { %v163_v49 = vpop.f32.mrb[1].mxu0  ;;  %v169_v50 = vadd.f32 %v1081_v48, %v1377_v47 }
  0xdd   :  { %v164_v51 = vadd.f32 %v1377_v47, %v163_v49 }
  0xde   :  { %v243_v57 = vmax.f32 %v169_v50, -0.5 }
  0xdf   :  { %v242_v52 = vmax.f32 %v164_v51, -0.5  ;;  %v1084_v53 = vpop.f32.mrb[2].mxu0 }
  0xe0   :  { %v173_v56 = vpop.f32.mrb[3].mxu0  ;;  %v259_v2 = vmin.f32 %v243_v57, 1.5  ;;  %v179_v3 = vadd.f32 %v1084_v53, %v1377_v47 }
  0xe1   :  { %v258_v58 = vmin.f32 %v242_v52, 1.5  ;;  %v174_v59 = vadd.f32 %v1377_v47, %v173_v56 }
  0xe2   :  { %v245_v11 = vmax.f32 %v179_v3, -0.5  ;;  %v810_v3 = vld [vmem:[%s1641_s5 + $0x78] sm:$0xff] }
  0xe3   :  { %v244_v61 = vmax.f32 %v174_v59, -0.5  ;;  %993 = vmatmul.mubr.msk.f32.vlgmr.msra.gmra.mrb[0].mxu1 %vm291_vm1, %v258_v58  ;;  %1009 = vmatmul.mubr.msk.f32.vlgmr.msra.gmra.mrb[16].mxu0 %vm291_vm1, %v258_v58  ;;  %v1087_v62 = vpop.f32.mrb[4].mxu0 }
  0xe4   :  { %410 = vmatprep.mubr.f32.mxu1 %v1212_v43  ;;  %571 = vmatprep.mubr.f32.mxu0 %v1212_v43  ;;  %v183_v1 = vpop.f32.mrb[5].mxu0  ;;  %v261_v18 = vmin.f32 %v245_v11, 1.5  ;;  %v189_v19 = vadd.f32 %v1087_v62, %v1377_v47  ;;  %v806_v62 = vld [vmem:[%s1641_s5 + $0x58] sm:$0xff] }
  0xe5   :  { %1182 = vmatpush3.bf16.msra.mxu1 %v1179_v46  ;;  %v260_v5 = vmin.f32 %v244_v61, 1.5  ;;  %v184_v6 = vadd.f32 %v1377_v47, %v183_v1 }
  0xe6   :  { %1184 = vmatprep.subr.bf16.mxu1 %v1183_v60  ;;  %v247_v25 = vmax.f32 %v189_v19, -0.5 }
  0xe7   :  { %994 = vmatmul.mubr.msk.f32.gmra.mrb[2].mxu1 %vm291_vm1, %v259_v2  ;;  %1010 = vmatmul.mubr.msk.f32.gmra.mrb[18].mxu0 %vm291_vm1, %v259_v2  ;;  %v1090_v7 = vpop.f32.mrb[6].mxu0  ;;  %v246_v13 = vmax.f32 %v184_v6, -0.5  ;;  %v809_v2 = vld [vmem:[%s1641_s5 + $0x70] sm:$0xff] }
  0xe8   :  { %416 = vmatprep.mubr.f32.mxu1 %v1212_v43  ;;  %577 = vmatprep.mubr.f32.mxu0 %v1212_v43  ;;  %v193_v10 = vpop.f32.mrb[7].mxu0  ;;  %v263_v29 = vmin.f32 %v247_v25, 1.5  ;;  %v199_v30 = vadd.f32 %v1090_v7, %v1377_v47 }
  0xe9   :  { %1186 = vmatpush3.bf16.msra.mxu1 %v1183_v60  ;;  %v262_v21 = vmin.f32 %v246_v13, 1.5  ;;  %v194_v22 = vadd.f32 %v1377_v47, %v193_v10 }
  0xea   :  { %1188 = vmatprep.subr.bf16.mxu1 %v1187_v4  ;;  %v249_v35 = vmax.f32 %v199_v30, -0.5 }
  0xeb   :  { %995 = vmatmul.mubr.msk.f32.gmra.mrb[4].mxu1 %vm291_vm1, %v260_v5  ;;  %1011 = vmatmul.mubr.msk.f32.gmra.mrb[20].mxu0 %vm291_vm1, %v260_v5  ;;  %v1093_v14 = vpop.f32.mrb[8].mxu0  ;;  %v248_v26 = vmax.f32 %v194_v22, -0.5  ;;  %v663_v5 = vlaneseq }
  0xec   :  { %422 = vmatprep.mubr.f32.mxu1 %v1212_v43  ;;  %583 = vmatprep.mubr.f32.mxu0 %v1212_v43  ;;  %v203_v17 = vpop.f32.mrb[9].mxu0  ;;  %v265_v37 = vmin.f32 %v249_v35, 1.5  ;;  %v209_v38 = vadd.f32 %v1093_v14, %v1377_v47 }
  0xed   :  { %1190 = vmatpush3.bf16.msra.mxu1 %v1187_v4  ;;  %v264_v31 = vmin.f32 %v248_v26, 1.5  ;;  %v204_v32 = vadd.f32 %v1377_v47, %v203_v17  ;;  %v1207_v4 = vpack.c.bf16 %v810_v3, %v809_v2  ;;  %v664_v6 = vshrl.u32 %v663_v5, 7 }
  0xee   :  { %1192 = vmatprep.subr.bf16.mxu1 %v1191_v12  ;;  %v251_v41 = vmax.f32 %v209_v38, -0.5 }
  0xef   :  { %996 = vmatmul.mubr.msk.f32.gmra.mrb[6].mxu1 %vm291_vm1, %v261_v18  ;;  %1012 = vmatmul.mubr.msk.f32.gmra.mrb[22].mxu0 %vm291_vm1, %v261_v18  ;;  %v1096_v23 = vpop.f32.mrb[10].mxu0  ;;  %v250_v36 = vmax.f32 %v204_v32, -0.5  ;;  %v665_v7 = vsub.s32 0, %v664_v6  ;;  %v669_v9 = vsub.s32 1, %v664_v6  ;;  %v673_v10 = vsub.s32 2, %v664_v6 }
  0xf0   :  { %428 = vmatprep.mubr.f32.mxu1 %v1212_v43  ;;  %589 = vmatprep.mubr.f32.mxu0 %v1212_v43  ;;  %v213_v24 = vpop.f32.mrb[11].mxu0  ;;  %v267_v44 = vmin.f32 %v251_v41, 1.5  ;;  %v219_v45 = vadd.f32 %v1096_v23, %v1377_v47  ;;  %v677_v13 = vsub.s32 3, %v664_v6 }
  0xf1   :  { %1194 = vmatpush3.bf16.msra.mxu1 %v1191_v12  ;;  %v266_v39 = vmin.f32 %v250_v36, 1.5  ;;  %v214_v40 = vadd.f32 %v1377_v47, %v213_v24  ;;  %v1502_v11 = vrot.slane %v274_v8, %v665_v7  ;;  %v1504_v12 = vrot.slane %v274_v8, %v669_v9 }
  0xf2   :  { %1196 = vmatprep.subr.bf16.mxu1 %v1195_v20  ;;  %v253_v49 = vmax.f32 %v219_v45, -0.5  ;;  %v1506_v16 = vrot.slane %v274_v8, %v673_v10 }
  0xf3   :  { %997 = vmatmul.mubr.msk.f32.gmra.mrb[8].mxu1 %vm291_vm1, %v262_v21  ;;  %1013 = vmatmul.mubr.msk.f32.gmra.mrb[24].mxu0 %vm291_vm1, %v262_v21  ;;  %v1099_v27 = vpop.f32.mrb[12].mxu0  ;;  %v252_v42 = vmax.f32 %v214_v40, -0.5  ;;  %v1510_v21 = vrot.slane %v274_v8, %v677_v13 }
  0xf4   :  { %434 = vmatprep.mubr.f32.mxu1 %v1212_v43  ;;  %595 = vmatprep.mubr.f32.mxu0 %v1212_v43  ;;  %v223_v28 = vpop.f32.mrb[13].mxu0  ;;  %v269_v51 = vmin.f32 %v253_v49, 1.5  ;;  %v229_v52 = vadd.f32 %v1099_v27, %v1377_v47 }
  0xf5   :  { %1198 = vmatpush3.bf16.msra.mxu1 %v1195_v20  ;;  %v268_v46 = vmin.f32 %v252_v42, 1.5  ;;  %v224_v48 = vadd.f32 %v1377_v47, %v223_v28 }
  0xf6   :  { %v255_v55 = vmax.f32 %v229_v52, -0.5 }
  0xf7   :  { %998 = vmatmul.mubr.msk.f32.gmra.mrb[10].mxu1 %vm291_vm1, %v263_v29  ;;  %1014 = vmatmul.mubr.msk.f32.gmra.mrb[26].mxu0 %vm291_vm1, %v263_v29  ;;  %v1102_v33 = vpop.f32.mrb[14].mxu0  ;;  %v254_v50 = vmax.f32 %v224_v48, -0.5 }
  0xf8   :  { %440 = vmatprep.mubr.f32.mxu1 %v1212_v43  ;;  %601 = vmatprep.mubr.f32.mxu0 %v1212_v43  ;;  %v233_v34 = vpop.f32.mrb[15].mxu0  ;;  %v271_v57 = vmin.f32 %v255_v55, 1.5  ;;  %v239_v58 = vadd.f32 %v1102_v33, %v1377_v47 }
  0xf9   :  { %v270_v53 = vmin.f32 %v254_v50, 1.5  ;;  %v234_v54 = vadd.f32 %v1377_v47, %v233_v34  ;;  %v805_v47 = vld [vmem:[%s1641_s5 + $0x50] sm:$0xff] }
  0xfa   :  { %v257_v60 = vmax.f32 %v239_v58, -0.5  ;;  %v1199_v63 = vpack.c.bf16 %v806_v62, %v805_v47 }
  0xfb   :  { %999 = vmatmul.mubr.msk.f32.gmra.mrb[12].mxu1 %vm291_vm1, %v264_v31  ;;  %1015 = vmatmul.mubr.msk.f32.gmra.mrb[28].mxu0 %vm291_vm1, %v264_v31  ;;  %v256_v56 = vmax.f32 %v234_v54, -0.5 }
  0xfc   :  { %446 = vmatprep.mubr.f32.mxu1 %v1212_v43  ;;  %607 = vmatprep.mubr.f32.mxu0 %v1212_v43  ;;  %v273_v61 = vmin.f32 %v257_v60, 1.5 }
  0xfd   :  { %v272_v59 = vmin.f32 %v256_v56, 1.5  ;;  %1200 = vmatprep.subr.bf16.mxu1 %v1199_v63 }
  0xfe   :  { %1202 = vmatpush3.bf16.msra.mxu1 %v1199_v63 }
  0xff   :  { %1000 = vmatmul.mubr.msk.f32.gmra.mrb[14].mxu1 %vm291_vm1, %v265_v37  ;;  %1016 = vmatmul.mubr.msk.f32.gmra.mrb[30].mxu0 %vm291_vm1, %v265_v37 }
 0x100   :  { %452 = vmatprep.mubr.f32.mxu1 %v1212_v43  ;;  %613 = vmatprep.mubr.f32.mxu0 %v1212_v43 }
 0x103   :  { %1001 = vmatmul.mubr.msk.f32.gmra.mrb[16].mxu1 %vm291_vm1, %v266_v39  ;;  %1017 = vmatmul.mubr.msk.f32.gmra.mrb[32].mxu0 %vm291_vm1, %v266_v39 }
 0x104   :  { %458 = vmatprep.mubr.f32.mxu1 %v1212_v43  ;;  %619 = vmatprep.mubr.f32.mxu0 %v1212_v43 }
 0x107   :  { %1002 = vmatmul.mubr.msk.f32.gmra.mrb[18].mxu1 %vm291_vm1, %v267_v44  ;;  %1018 = vmatmul.mubr.msk.f32.gmra.mrb[34].mxu0 %vm291_vm1, %v267_v44 }
 0x108   :  { %464 = vmatprep.mubr.f32.mxu1 %v1212_v43  ;;  %625 = vmatprep.mubr.f32.mxu0 %v1212_v43 }
 0x10b   :  { %1003 = vmatmul.mubr.msk.f32.gmra.mrb[20].mxu1 %vm291_vm1, %v268_v46  ;;  %1019 = vmatmul.mubr.msk.f32.gmra.mrb[36].mxu0 %vm291_vm1, %v268_v46 }
 0x10c   :  { %470 = vmatprep.mubr.f32.mxu1 %v1212_v43  ;;  %631 = vmatprep.mubr.f32.mxu0 %v1212_v43 }
 0x10f   :  { %1004 = vmatmul.mubr.msk.f32.gmra.mrb[22].mxu1 %vm291_vm1, %v269_v51  ;;  %1020 = vmatmul.mubr.msk.f32.gmra.mrb[38].mxu0 %vm291_vm1, %v269_v51 }
 0x110   :  { %476 = vmatprep.mubr.f32.mxu1 %v1212_v43  ;;  %637 = vmatprep.mubr.f32.mxu0 %v1212_v43 }
 0x113   :  { %1005 = vmatmul.mubr.msk.f32.gmra.mrb[24].mxu1 %vm291_vm1, %v270_v53  ;;  %1021 = vmatmul.mubr.msk.f32.gmra.mrb[40].mxu0 %vm291_vm1, %v270_v53 }
 0x114   :  { %482 = vmatprep.mubr.f32.mxu1 %v1212_v43  ;;  %643 = vmatprep.mubr.f32.mxu0 %v1212_v43 }
 0x117   :  { %1006 = vmatmul.mubr.msk.f32.gmra.mrb[26].mxu1 %vm291_vm1, %v271_v57  ;;  %1022 = vmatmul.mubr.msk.f32.gmra.mrb[42].mxu0 %vm291_vm1, %v271_v57 }
 0x118   :  { %488 = vmatprep.mubr.f32.mxu1 %v1212_v43  ;;  %649 = vmatprep.mubr.f32.mxu0 %v1212_v43 }
 0x11b   :  { %1007 = vmatmul.mubr.msk.f32.gmra.mrb[28].mxu1 %vm291_vm1, %v272_v59  ;;  %1023 = vmatmul.mubr.msk.f32.gmra.mrb[44].mxu0 %vm291_vm1, %v272_v59 }
 0x11c   :  { %494 = vmatprep.mubr.f32.mxu1 %v1212_v43  ;;  %655 = vmatprep.mubr.f32.mxu0 %v1212_v43  ;;  %v807_v43 = vld [vmem:[%s1641_s5 + $0x60] sm:$0xff] }
 0x11d   :  { %v1203_v1 = vpack.c.bf16 %v808_v0, %v807_v43 }
 0x11f   :  { %1008 = vmatmul.mubr.msk.f32.gmra.mrb[30].mxu1 %vm291_vm1, %v273_v61  ;;  %1024 = vmatmul.mubr.msk.f32.gmra.mrb[46].mxu0 %vm291_vm1, %v273_v61 }
 0x120   :  { %1204 = vmatprep.subr.bf16.mxu1 %v1203_v1 }
 0x121   :  { %1206 = vmatpush3.bf16.msra.mxu1 %v1203_v1 }
 0x122   :  { %1208 = vmatprep.subr.bf16.mxu1 %v1207_v4 }
 0x125   :  { %1210 = vmatpush3.bf16.msra.mxu1 %v1207_v4 }
 0x1b6   :  { %v406_v14 = vpop.f32.mrb[0].mxu1  ;;  %v567_v15 = vpop.f32.mrb[16].mxu0 }
 0x1b7   :  { %v683_v17 = vadd.f32 %v1502_v11, %v406_v14  ;;  %v408_v18 = vpop.f32.mrb[1].mxu1  ;;  %v569_v19 = vpop.f32.mrb[17].mxu0  ;;  %v685_v22 = vadd.f32 %v1506_v16, %v567_v15 }
 0x1b8   :  { %v684_v20 = vadd.f32 %v1504_v12, %v408_v18  ;;  %v686_v29 = vadd.f32 %v1510_v21, %v569_v19 }
 0x1ba   :  { %v747_v23 = vmul.f32 %v684_v20, %v683_v17  ;;  %v412_v24 = vpop.f32.mrb[2].mxu1  ;;  %v573_v25 = vpop.f32.mrb[18].mxu0 }
 0x1bb   :  { %v687_v26 = vadd.f32 %v1502_v11, %v412_v24  ;;  %v414_v27 = vpop.f32.mrb[3].mxu1  ;;  %v575_v28 = vpop.f32.mrb[19].mxu0  ;;  %v689_v33 = vadd.f32 %v1506_v16, %v573_v25 }
 0x1bc   :  { %v763_v30 = vmul.f32 %v747_v23, %v685_v22  ;;  %v688_v31 = vadd.f32 %v1504_v12, %v414_v27  ;;  %v690_v40 = vadd.f32 %v1510_v21, %v575_v28 }
 0x1be   :  { %v779_v32 = vmul.f32 %v763_v30, %v686_v29  ;;  %v748_v34 = vmul.f32 %v688_v31, %v687_v26  ;;  %v418_v35 = vpop.f32.mrb[4].mxu1  ;;  %v579_v36 = vpop.f32.mrb[20].mxu0 }
 0x1bf   :  { %v691_v37 = vadd.f32 %v1502_v11, %v418_v35  ;;  %v420_v38 = vpop.f32.mrb[5].mxu1  ;;  %v581_v39 = vpop.f32.mrb[21].mxu0  ;;  %v693_v45 = vadd.f32 %v1506_v16, %v579_v36 }
 0x1c0   :  { %v764_v41 = vmul.f32 %v748_v34, %v689_v33  ;;  %v692_v42 = vadd.f32 %v1504_v12, %v420_v38  ;;  %1135 = vmatprep.mubr.f32.mxu1 %v779_v32  ;;  %v694_v53 = vadd.f32 %v1510_v21, %v581_v39 }
 0x1c2   :  { %v780_v44 = vmul.f32 %v764_v41, %v690_v40  ;;  %v749_v46 = vmul.f32 %v692_v42, %v691_v37  ;;  %v424_v48 = vpop.f32.mrb[6].mxu1  ;;  %v585_v49 = vpop.f32.mrb[22].mxu0 }
 0x1c3   :  { %v695_v50 = vadd.f32 %v1502_v11, %v424_v48  ;;  %v426_v51 = vpop.f32.mrb[7].mxu1  ;;  %v587_v52 = vpop.f32.mrb[23].mxu0  ;;  %v697_v57 = vadd.f32 %v1506_v16, %v585_v49 }
 0x1c4   :  { %v765_v54 = vmul.f32 %v749_v46, %v693_v45  ;;  %v696_v55 = vadd.f32 %v1504_v12, %v426_v51  ;;  %1136 = vmatmul.mubr.f32.vlgmr.msra.gmra.mrb[32].mxu1 %v780_v44  ;;  %v698_v63 = vadd.f32 %v1510_v21, %v587_v52 }
 0x1c6   :  { %v781_v56 = vmul.f32 %v765_v54, %v694_v53  ;;  %v750_v58 = vmul.f32 %v696_v55, %v695_v50  ;;  %v430_v59 = vpop.f32.mrb[8].mxu1  ;;  %v591_v60 = vpop.f32.mrb[24].mxu0 }
 0x1c7   :  { %v699_v61 = vadd.f32 %v1502_v11, %v430_v59  ;;  %v432_v47 = vpop.f32.mrb[9].mxu1  ;;  %v593_v62 = vpop.f32.mrb[25].mxu0  ;;  %v701_v2 = vadd.f32 %v1506_v16, %v591_v60 }
 0x1c8   :  { %v766_v43 = vmul.f32 %v750_v58, %v697_v57  ;;  %v700_v0 = vadd.f32 %v1504_v12, %v432_v47  ;;  %1138 = vmatprep.mubr.f32.mxu1 %v781_v56  ;;  %v702_v9 = vadd.f32 %v1510_v21, %v593_v62 }
 0x1ca   :  { %v782_v1 = vmul.f32 %v766_v43, %v698_v63  ;;  %v751_v3 = vmul.f32 %v700_v0, %v699_v61  ;;  %v436_v4 = vpop.f32.mrb[10].mxu1  ;;  %v597_v5 = vpop.f32.mrb[26].mxu0 }
 0x1cb   :  { %v703_v6 = vadd.f32 %v1502_v11, %v436_v4  ;;  %v438_v7 = vpop.f32.mrb[11].mxu1  ;;  %v599_v8 = vpop.f32.mrb[27].mxu0  ;;  %v705_v15 = vadd.f32 %v1506_v16, %v597_v5 }
 0x1cc   :  { %v767_v10 = vmul.f32 %v751_v3, %v701_v2  ;;  %v704_v13 = vadd.f32 %v1504_v12, %v438_v7  ;;  %1139 = vmatmul.mubr.f32.gmra.mrb[34].mxu1 %v782_v1  ;;  %v706_v24 = vadd.f32 %v1510_v21, %v599_v8 }
 0x1ce   :  { %v783_v14 = vmul.f32 %v767_v10, %v702_v9  ;;  %v752_v17 = vmul.f32 %v704_v13, %v703_v6  ;;  %v442_v18 = vpop.f32.mrb[12].mxu1  ;;  %v603_v19 = vpop.f32.mrb[28].mxu0 }
 0x1cf   :  { %v707_v20 = vadd.f32 %v1502_v11, %v442_v18  ;;  %v444_v22 = vpop.f32.mrb[13].mxu1  ;;  %v605_v23 = vpop.f32.mrb[29].mxu0  ;;  %v709_v28 = vadd.f32 %v1506_v16, %v603_v19 }
 0x1d0   :  { %v768_v25 = vmul.f32 %v752_v17, %v705_v15  ;;  %v708_v26 = vadd.f32 %v1504_v12, %v444_v22  ;;  %1141 = vmatprep.mubr.f32.mxu1 %v783_v14  ;;  %v710_v35 = vadd.f32 %v1510_v21, %v605_v23 }
 0x1d2   :  { %v784_v27 = vmul.f32 %v768_v25, %v706_v24  ;;  %v753_v29 = vmul.f32 %v708_v26, %v707_v20  ;;  %v448_v30 = vpop.f32.mrb[14].mxu1  ;;  %v609_v31 = vpop.f32.mrb[30].mxu0 }
 0x1d3   :  { %v711_v32 = vadd.f32 %v1502_v11, %v448_v30  ;;  %v450_v33 = vpop.f32.mrb[15].mxu1  ;;  %v611_v34 = vpop.f32.mrb[31].mxu0  ;;  %v713_v39 = vadd.f32 %v1506_v16, %v609_v31 }
 0x1d4   :  { %v769_v36 = vmul.f32 %v753_v29, %v709_v28  ;;  %v712_v37 = vadd.f32 %v1504_v12, %v450_v33  ;;  %1142 = vmatmul.mubr.f32.gmra.mrb[36].mxu1 %v784_v27  ;;  %v714_v48 = vadd.f32 %v1510_v21, %v611_v34 }
 0x1d6   :  { %v785_v38 = vmul.f32 %v769_v36, %v710_v35  ;;  %v754_v40 = vmul.f32 %v712_v37, %v711_v32  ;;  %v454_v41 = vpop.f32.mrb[16].mxu1  ;;  %v615_v42 = vpop.f32.mrb[32].mxu0 }
 0x1d7   :  { %v715_v44 = vadd.f32 %v1502_v11, %v454_v41  ;;  %v456_v45 = vpop.f32.mrb[17].mxu1  ;;  %v617_v46 = vpop.f32.mrb[33].mxu0  ;;  %v717_v52 = vadd.f32 %v1506_v16, %v615_v42 }
 0x1d8   :  { %v770_v49 = vmul.f32 %v754_v40, %v713_v39  ;;  %v716_v50 = vadd.f32 %v1504_v12, %v456_v45  ;;  %1144 = vmatprep.mubr.f32.mxu1 %v785_v38  ;;  %v718_v59 = vadd.f32 %v1510_v21, %v617_v46 }
 0x1da   :  { %v786_v51 = vmul.f32 %v770_v49, %v714_v48  ;;  %v755_v53 = vmul.f32 %v716_v50, %v715_v44  ;;  %v460_v54 = vpop.f32.mrb[18].mxu1  ;;  %v621_v55 = vpop.f32.mrb[34].mxu0 }
 0x1db   :  { %v719_v56 = vadd.f32 %v1502_v11, %v460_v54  ;;  %v462_v57 = vpop.f32.mrb[19].mxu1  ;;  %v623_v58 = vpop.f32.mrb[35].mxu0  ;;  %v721_v62 = vadd.f32 %v1506_v16, %v621_v55 }
 0x1dc   :  { %v771_v60 = vmul.f32 %v755_v53, %v717_v52  ;;  %v720_v61 = vadd.f32 %v1504_v12, %v462_v57  ;;  %1145 = vmatmul.mubr.f32.gmra.mrb[38].mxu1 %v786_v51  ;;  %v722_v4 = vadd.f32 %v1510_v21, %v623_v58 }
 0x1de   :  { %v787_v47 = vmul.f32 %v771_v60, %v718_v59  ;;  %v756_v63 = vmul.f32 %v720_v61, %v719_v56  ;;  %v466_v43 = vpop.f32.mrb[20].mxu1  ;;  %v627_v0 = vpop.f32.mrb[36].mxu0 }
 0x1df   :  { %v723_v1 = vadd.f32 %v1502_v11, %v466_v43  ;;  %v468_v2 = vpop.f32.mrb[21].mxu1  ;;  %v629_v3 = vpop.f32.mrb[37].mxu0  ;;  %v725_v8 = vadd.f32 %v1506_v16, %v627_v0 }
 0x1e0   :  { %v772_v5 = vmul.f32 %v756_v63, %v721_v62  ;;  %v724_v6 = vadd.f32 %v1504_v12, %v468_v2  ;;  %1147 = vmatprep.mubr.f32.mxu1 %v787_v47  ;;  %v726_v18 = vadd.f32 %v1510_v21, %v629_v3 }
 0x1e2   :  { %v788_v7 = vmul.f32 %v772_v5, %v722_v4  ;;  %v757_v9 = vmul.f32 %v724_v6, %v723_v1  ;;  %v472_v10 = vpop.f32.mrb[22].mxu1  ;;  %v633_v13 = vpop.f32.mrb[38].mxu0 }
 0x1e3   :  { %v727_v14 = vadd.f32 %v1502_v11, %v472_v10  ;;  %v474_v15 = vpop.f32.mrb[23].mxu1  ;;  %v635_v17 = vpop.f32.mrb[39].mxu0  ;;  %v729_v23 = vadd.f32 %v1506_v16, %v633_v13 }
 0x1e4   :  { %v773_v19 = vmul.f32 %v757_v9, %v725_v8  ;;  %v728_v20 = vadd.f32 %v1504_v12, %v474_v15  ;;  %1148 = vmatmul.mubr.f32.gmra.mrb[40].mxu1 %v788_v7  ;;  %v730_v30 = vadd.f32 %v1510_v21, %v635_v17 }
 0x1e6   :  { %v789_v22 = vmul.f32 %v773_v19, %v726_v18  ;;  %v758_v24 = vmul.f32 %v728_v20, %v727_v14  ;;  %v478_v25 = vpop.f32.mrb[24].mxu1  ;;  %v639_v26 = vpop.f32.mrb[40].mxu0 }
 0x1e7   :  { %v731_v27 = vadd.f32 %v1502_v11, %v478_v25  ;;  %v480_v28 = vpop.f32.mrb[25].mxu1  ;;  %v641_v29 = vpop.f32.mrb[41].mxu0  ;;  %v733_v34 = vadd.f32 %v1506_v16, %v639_v26 }
 0x1e8   :  { %v774_v31 = vmul.f32 %v758_v24, %v729_v23  ;;  %v732_v32 = vadd.f32 %v1504_v12, %v480_v28  ;;  %1150 = vmatprep.mubr.f32.mxu1 %v789_v22  ;;  %v734_v41 = vadd.f32 %v1510_v21, %v641_v29 }
 0x1ea   :  { %v790_v33 = vmul.f32 %v774_v31, %v730_v30  ;;  %v759_v35 = vmul.f32 %v732_v32, %v731_v27  ;;  %v484_v36 = vpop.f32.mrb[26].mxu1  ;;  %v645_v37 = vpop.f32.mrb[42].mxu0 }
 0x1eb   :  { %v735_v38 = vadd.f32 %v1502_v11, %v484_v36  ;;  %v486_v39 = vpop.f32.mrb[27].mxu1  ;;  %v647_v40 = vpop.f32.mrb[43].mxu0  ;;  %v737_v46 = vadd.f32 %v1506_v16, %v645_v37 }
 0x1ec   :  { %v775_v42 = vmul.f32 %v759_v35, %v733_v34  ;;  %v736_v44 = vadd.f32 %v1504_v12, %v486_v39  ;;  %1151 = vmatmul.mubr.f32.gmra.mrb[42].mxu1 %v790_v33  ;;  %v738_v54 = vadd.f32 %v1510_v21, %v647_v40 }
 0x1ee   :  { %v791_v45 = vmul.f32 %v775_v42, %v734_v41  ;;  %v760_v48 = vmul.f32 %v736_v44, %v735_v38  ;;  %v490_v49 = vpop.f32.mrb[28].mxu1  ;;  %v651_v50 = vpop.f32.mrb[44].mxu0 }
 0x1ef   :  { %v739_v51 = vadd.f32 %v1502_v11, %v490_v49  ;;  %v492_v52 = vpop.f32.mrb[29].mxu1  ;;  %v653_v53 = vpop.f32.mrb[45].mxu0  ;;  %v741_v58 = vadd.f32 %v1506_v16, %v651_v50 }
 0x1f0   :  { %v776_v55 = vmul.f32 %v760_v48, %v737_v46  ;;  %v740_v56 = vadd.f32 %v1504_v12, %v492_v52  ;;  %1153 = vmatprep.mubr.f32.mxu1 %v791_v45  ;;  %v742_v43 = vadd.f32 %v1510_v21, %v653_v53 }
 0x1f2   :  { %v792_v57 = vmul.f32 %v776_v55, %v738_v54  ;;  %v761_v59 = vmul.f32 %v740_v56, %v739_v51  ;;  %v496_v60 = vpop.f32.mrb[30].mxu1  ;;  %v657_v61 = vpop.f32.mrb[46].mxu0 }
 0x1f3   :  { %v743_v47 = vadd.f32 %v1502_v11, %v496_v60  ;;  %v498_v62 = vpop.f32.mrb[31].mxu1  ;;  %v659_v63 = vpop.f32.mrb[47].mxu0  ;;  %v745_v3 = vadd.f32 %v1506_v16, %v657_v61 }
 0x1f4   :  { %v777_v0 = vmul.f32 %v761_v59, %v741_v58  ;;  %v744_v1 = vadd.f32 %v1504_v12, %v498_v62  ;;  %1154 = vmatmul.mubr.f32.gmra.mrb[44].mxu1 %v792_v57  ;;  %v746_v5 = vadd.f32 %v1510_v21, %v659_v63 }
 0x1f6   :  { %v793_v2 = vmul.f32 %v777_v0, %v742_v43  ;;  %v762_v4 = vmul.f32 %v744_v1, %v743_v47 }
 0x1f8   :  { %v778_v6 = vmul.f32 %v762_v4, %v745_v3  ;;  %1156 = vmatprep.mubr.f32.mxu1 %v793_v2 }
 0x1fa   :  { %v794_v7 = vmul.f32 %v778_v6, %v746_v5 }
 0x1fc   :  { %1157 = vmatmul.mubr.f32.gmra.mrb[46].mxu1 %v794_v7 }
 0x297   :  { %v1137_v8 = vpop.f32.mrb[32].mxu1 }
 0x298   :  { %957 = vst.msk [vmem:[%s1644_s6 + $0x8] sm:$0xff] %vm291_vm1, %v1137_v8  ;;  %v877_v11 = vpop.f32.mrb[33].mxu1 }
 0x299   :  { %956 = vst.msk [vmem:[%s1644_s6] sm:$0xff] %vm291_vm1, %v877_v11 }
 0x29f   :  { %v1140_v12 = vpop.f32.mrb[34].mxu1 }
 0x2a0   :  { %959 = vst.msk [vmem:[%s1644_s6 + $0x18] sm:$0xff] %vm291_vm1, %v1140_v12  ;;  %v887_v16 = vpop.f32.mrb[35].mxu1 }
 0x2a1   :  { %958 = vst.msk [vmem:[%s1644_s6 + $0x10] sm:$0xff] %vm291_vm1, %v887_v16 }
 0x2a7   :  { %v1143_v21 = vpop.f32.mrb[36].mxu1 }
 0x2a8   :  { %961 = vst.msk [vmem:[%s1644_s6 + $0x28] sm:$0xff] %vm291_vm1, %v1143_v21  ;;  %v897_v9 = vpop.f32.mrb[37].mxu1 }
 0x2a9   :  { %960 = vst.msk [vmem:[%s1644_s6 + $0x20] sm:$0xff] %vm291_vm1, %v897_v9 }
 0x2af   :  { %v1146_v10 = vpop.f32.mrb[38].mxu1 }
 0x2b0   :  { %963 = vst.msk [vmem:[%s1644_s6 + $0x38] sm:$0xff] %vm291_vm1, %v1146_v10  ;;  %v907_v13 = vpop.f32.mrb[39].mxu1 }
 0x2b1   :  { %962 = vst.msk [vmem:[%s1644_s6 + $0x30] sm:$0xff] %vm291_vm1, %v907_v13 }
 0x2b7   :  { %v1149_v14 = vpop.f32.mrb[40].mxu1 }
 0x2b8   :  { %965 = vst.msk [vmem:[%s1644_s6 + $0x48] sm:$0xff] %vm291_vm1, %v1149_v14  ;;  %v917_v15 = vpop.f32.mrb[41].mxu1 }
 0x2b9   :  { %964 = vst.msk [vmem:[%s1644_s6 + $0x40] sm:$0xff] %vm291_vm1, %v917_v15 }
 0x2bf   :  { %v1152_v17 = vpop.f32.mrb[42].mxu1 }
 0x2c0   :  { %967 = vst.msk [vmem:[%s1644_s6 + $0x58] sm:$0xff] %vm291_vm1, %v1152_v17  ;;  %v927_v18 = vpop.f32.mrb[43].mxu1 }
 0x2c1   :  { %966 = vst.msk [vmem:[%s1644_s6 + $0x50] sm:$0xff] %vm291_vm1, %v927_v18 }
 0x2c7   :  { %v1155_v19 = vpop.f32.mrb[44].mxu1 }
 0x2c8   :  { %969 = vst.msk [vmem:[%s1644_s6 + $0x68] sm:$0xff] %vm291_vm1, %v1155_v19  ;;  %v937_v20 = vpop.f32.mrb[45].mxu1 }
 0x2c9   :  { %968 = vst.msk [vmem:[%s1644_s6 + $0x60] sm:$0xff] %vm291_vm1, %v937_v20 }
 0x2cf   :  { %v1158_v22 = vpop.f32.mrb[46].mxu1 }
 0x2d0   :  { %971 = vst.msk [vmem:[%s1644_s6 + $0x78] sm:$0xff] %vm291_vm1, %v1158_v22  ;;  %v947_v23 = vpop.f32.mrb[47].mxu1 }
 0x2d1   :  { %970 = vst.msk [vmem:[%s1644_s6 + $0x70] sm:$0xff] %vm291_vm1, %v947_v23 }

</bundles_post_ra>
